<compile_context>
chip_gen: v7x
topology: tpu7x:2x2x1
jax: 0.10.0
libtpu: 0.0.40
codegen_flags: <defaults>
</compile_context>

<pallas_src>
import functools

import jax
import jax.numpy as jnp
from jax.experimental import pallas as pl
from jax.experimental.pallas import tpu as pltpu


def _round_up(x, mult):
    return ((x + mult - 1) // mult) * mult


def _cdiv(a, b):
    return (a + b - 1) // b


def _act_dtype():
    """bf16 activations on chips with a bf16 VPU/EUP (v6e/v7x); f32 otherwise."""
    try:
        kind = jax.devices()[0].device_kind.lower()
    except Exception:
        return jnp.float32
    for tag in ("v2", "v3", "v4", "v5"):
        if tag in kind:
            return jnp.float32
    return jnp.bfloat16


def _swish(x, dtype):
    x = x.astype(dtype)
    return x * jax.nn.sigmoid(x)


def _tile_footprint_bytes(tm, k, chout_pad):
    """Per-tile VMEM footprint estimate: lane-padded (128) double-buffered data
    blocks + f32 MLP intermediates + resident weights/misc."""
    lane = 128
    ab_buf = 2 * tm * k * lane * 2        # (TM*k, d->128) bf16, double-buffered
    vals_buf = 2 * tm * k * lane * 2      # (TM, k, ci->128) bf16, double-buffered
    qm_buf = 2 * tm * lane * 4            # (TM, 1->128) f32
    out_buf = 2 * tm * max(chout_pad, lane) * 2
    mlp_tmp = tm * k * lane * 4 * 3       # h1/h2/kw f32 spill backing
    weights = 2 * 1024 * 1024             # padded weight tiles + Mosaic scratch
    return ab_buf + vals_buf + qm_buf + out_buf + mlp_tmp + weights


def _choose_tile(m, bs, k, chout_pad, target=256, budget=24 * 1024 * 1024):
    """Pick the query tile TM: big enough to amortize the ~0.35us per-grid-step
    overhead, small enough to fit a v7x-safe VMEM budget and keep >=4 grid steps
    (dual TensorCore load balance). TM is always a multiple of 8."""
    tm = max(8, min(_round_up(m, 8), _round_up(target, 8)))
    while tm > 8 and _tile_footprint_bytes(tm, k, chout_pad) > budget:
        tm = _round_up(max(8, tm // 2), 8)
    while tm > 8 and bs * _cdiv(m, tm) < 4:
        tm = _round_up(max(8, tm // 2), 8)
    vmem_limit = int(min(
        max(_tile_footprint_bytes(tm, k, chout_pad) + (4 << 20), 16 << 20),
        32 << 20))
    return tm, vmem_limit


# ----------------------------------------------------------------------------
# Pallas kernel: LieConv.point_convolve for one (batch, query-tile) block
#   ab     : (1, TM*k, d)    bf16  -- flattened (m,k) group embeddings
#   vals   : (1, TM, k, ci)  bf16  -- neighborhood values, nbhd mask pre-folded
#   qmask  : (1, TM, 1)      f32   -- query validity mask (convolved_wzeros)
#   weightnet : Linear(d,32)+Swish, Linear(32,32)+Swish, Linear(32,16)+Swish
#               (bn=False in the PointConv default -> identity norm layers)
#   final  : one (TM, ci*16) @ (ci*16, chout_pad) matmul; wl rows follow the
#            PyTorch .view flatten order (c-major: row = c*16 + w), zero-padded
#            to 128 output lanes wrapper-side.
# ----------------------------------------------------------------------------
def lieconv_point_convolve_kernel(
    ab_ref, vals_ref, qmask_ref,
    w1_ref, b1_ref, w2_ref, b2_ref, w3_ref, b3_ref,
    wl_ref, bl_ref,
    out_ref,
    *, tm, k, ci, cmco_ci, act_dtype,
):
    x = ab_ref[0]                                   # (TM*k, d) bf16

    # --- WeightNet MLP: bf16 MXU matmuls, f32 accumulation ---
    h = jnp.dot(x, w1_ref[...], preferred_element_type=jnp.float32) + b1_ref[...]
    h = _swish(h, act_dtype).astype(jnp.bfloat16)
    h = jnp.dot(h, w2_ref[...], preferred_element_type=jnp.float32) + b2_ref[...]
    h = _swish(h, act_dtype).astype(jnp.bfloat16)
    kw = jnp.dot(h, w3_ref[...], preferred_element_type=jnp.float32) + b3_ref[...]
    kw = _swish(kw, act_dtype)                      # (TM*k, cmco_ci)

    # --- masked nbhd contraction on the VPU (no per-query MXU weight reloads) ---
    # nbhd_vals were zeroed for invalid neighbors in the wrapper; since the mask
    # is {0,1}, (vals*mask)^T @ (kw*mask) == (vals*mask)^T @ kw.
    kw3 = kw.reshape(tm, k, cmco_ci).astype(jnp.float32)     # (TM, k, 16)
    vals = vals_ref[0].astype(jnp.float32)                   # (TM, k, ci)
    parts = []
    for c in range(ci):                                      # ci tiny (4): unrolled
        parts.append(jnp.sum(kw3 * vals[:, :, c:c + 1], axis=1))    # (TM, 16)
    # c-major concat == PyTorch's (ci, cmco_ci).view(-1) flatten order
    pcv = jnp.concatenate(parts, axis=-1)                    # (TM, ci*16) f32

    # --- final Linear: single K=64, N=chout_pad(=128) matmul ---
    acc = jnp.dot(pcv.astype(jnp.bfloat16), wl_ref[...],
                  preferred_element_type=jnp.float32) + bl_ref[...]

    # fold the reference's convolved_wzeros query-mask into the (bf16) store
    out_ref[0] = (acc * qmask_ref[0]).astype(out_ref.dtype)


def point_convolve(nbhd_ab, nbhd_vals, nbhd_mask, query_mask, params):
    bs, m, k, d = nbhd_ab.shape
    ci = nbhd_vals.shape[-1]
    w1, b1, w2, b2, w3, b3, wl, bl = params
    hidden = w1.shape[-1]
    cmco_ci = w3.shape[-1]
    chout = wl.shape[-1]
    chout_pad = _round_up(chout, 128)     # lane-dense output stores
    act_dtype = _act_dtype()

    tm, vmem_limit = _choose_tile(m, bs, k, chout_pad)
    m_pad = _round_up(m, tm)

    # --- wrapper-side layout plumbing (fuses with the XLA gather) ---
    ab = nbhd_ab.astype(jnp.bfloat16)
    vals_m = jnp.where(nbhd_mask[..., None], nbhd_vals, 0).astype(jnp.bfloat16)
    qmask = query_mask.astype(jnp.float32)[..., None]            # (bs, m, 1)
    if m_pad != m:
        pad = m_pad - m
        ab = jnp.pad(ab, ((0, 0), (0, pad), (0, 0), (0, 0)))
        vals_m = jnp.pad(vals_m, ((0, 0), (0, pad), (0, 0), (0, 0)))
        qmask = jnp.pad(qmask, ((0, 0), (0, pad), (0, 0)))       # padded queries -> 0
    ab_flat = ab.reshape(bs, m_pad * k, d)

    # wl rows are already in PyTorch's c-major flatten order -> only pad chout.
    wl_pad = jnp.pad(wl, ((0, 0), (0, chout_pad - chout))).astype(jnp.bfloat16)
    bl_pad = jnp.pad(bl, ((0, 0), (0, chout_pad - chout))).astype(jnp.float32)
    w1b, w2b, w3b = (w.astype(jnp.bfloat16) for w in (w1, w2, w3))
    b1f, b2f, b3f = (b.astype(jnp.float32) for b in (b1, b2, b3))

    kernel = functools.partial(lieconv_point_convolve_kernel,
                               tm=tm, k=k, ci=ci, cmco_ci=cmco_ci,
                               act_dtype=act_dtype)

    # Weights/biases use a constant index_map so Pallas keeps them resident;
    # (pipeline_mode=pl.Buffered(1) would shave the redundant second buffer,
    # but the tensors are tiny -- skipped as a low-priority tidy-up.)
    def full(arr):
        nd = arr.ndim
        return pl.BlockSpec(arr.shape, lambda b, i, _nd=nd: (0,) * _nd)

    flops = (bs * m_pad * k * 2 * (d * hidden + hidden * hidden + hidden * cmco_ci)
             + bs * m_pad * k * 2 * ci * cmco_ci
             + bs * m_pad * 2 * ci * cmco_ci * chout_pad)
    transcendentals = bs * m_pad * k * (2 * hidden + cmco_ci)
    bytes_accessed = (bs * m_pad * k * d * 2 + bs * m_pad * k * ci * 2
                      + bs * m_pad * 4
                      + (d * hidden + hidden * hidden + hidden * cmco_ci
                         + ci * cmco_ci * chout_pad) * 2
                      + (2 * hidden + cmco_ci + chout_pad) * 4
                      + bs * m_pad * chout_pad * 2)

    out = pl.pallas_call(
        kernel,
        out_shape=jax.ShapeDtypeStruct((bs, m_pad, chout_pad), jnp.bfloat16),
        grid=(bs, m_pad // tm),
        in_specs=[
            pl.BlockSpec((1, tm * k, d), lambda b, i: (b, i, 0)),
            pl.BlockSpec((1, tm, k, ci), lambda b, i: (b, i, 0, 0)),
            pl.BlockSpec((1, tm, 1), lambda b, i: (b, i, 0)),
            full(w1b), full(b1f), full(w2b), full(b2f), full(w3b), full(b3f),
            full(wl_pad), full(bl_pad),
        ],
        out_specs=pl.BlockSpec((1, tm, chout_pad), lambda b, i: (b, i, 0)),
        compiler_params=pltpu.CompilerParams(
            dimension_semantics=("parallel", "parallel"),
            vmem_limit_bytes=vmem_limit),
        cost_estimate=pl.CostEstimate(
            flops=int(flops),
            transcendentals=int(transcendentals),
            bytes_accessed=int(bytes_accessed)),
    )(ab_flat, vals_m, qmask, w1b, b1f, w2b, b2f, w3b, b3f, wl_pad, bl_pad)

    # drop the m / chout padding; cast back to f32 to keep the module interface
    return out[:, :m, :chout].astype(jnp.float32)


# ----------------------------------------------------------------------------
# JAX glue: LieConv.extract_neighborhood (ball query with noisy top-k + gather)
# ----------------------------------------------------------------------------
def extract_neighborhood(pairs_ab, inp_vals, mask, *, nbhd, r, key):
    bs, n = inp_vals.shape[:2]
    ab_at_query = pairs_ab                  # query_indices is None (ds_frac == 1)
    mask_at_query = mask

    # TODO(synk): SE3.distance weights the rotation/translation parts with alpha;
    # a plain L2 norm over the embedding is used here as the group distance.
    dists = jnp.sqrt(jnp.sum(ab_at_query ** 2, axis=-1))           # (bs, m, n) f32

    k = min(nbhd, n)
    # within_ball already ANDs the validity masks, so the reference's
    # where(mask, dists, 1e8) clamp is redundant and dropped.
    within_ball = (dists < r) & mask[:, None, :] & mask_at_query[:, :, None]
    noise = jax.random.uniform(key, within_ball.shape, dtype=jnp.float32)
    _, nbhd_idx = jax.lax.top_k(within_ball.astype(jnp.float32) + noise, k)

    # cast BEFORE the gather so the (bs,m,k,*) temporaries are written/read as bf16
    ab_bf16 = pairs_ab.astype(jnp.bfloat16)
    vals_bf16 = inp_vals.astype(jnp.bfloat16)

    B = jnp.arange(bs)[:, None, None]
    M = jnp.arange(n)[None, :, None]
    nbhd_ab = ab_bf16[B, M, nbhd_idx]           # (bs, m, k, d)  bf16
    nbhd_vals = vals_bf16[B, nbhd_idx]          # (bs, m, k, ci) bf16
    # Matching the reference point_convolve, the conv mask is the gathered
    # validity mask mask[B, nbhd_idx] (valid_within_ball only feeds the
    # training-time fill EMA, which is skipped).
    nbhd_mask = mask[B, nbhd_idx]               # (bs, m, k)

    # TODO(synk): training-time radius self.r / fill_frac_ema EMA update skipped
    # (eval-mode forward).
    return nbhd_ab, nbhd_vals, nbhd_mask


# ----------------------------------------------------------------------------
# Full LieConv forward (ds_frac = 1 -> FPS subsample is the identity)
# ----------------------------------------------------------------------------
def lieconv_forward(pairs_ab, inp_vals, mask, params, *, nbhd=32, r=2.0, key=None):
    # FPSsubsample with ds_frac=1: sub_* == inputs, query_indices = None
    sub_ab, sub_vals, sub_mask = pairs_ab, inp_vals, mask

    nbhd_ab, nbhd_vals, nbhd_mask = extract_neighborhood(
        pairs_ab, inp_vals, mask, nbhd=nbhd, r=r, key=key)

    # query-mask zeroing (reference's convolved_wzeros) is folded into the kernel
    convolved_wzeros = point_convolve(nbhd_ab, nbhd_vals, nbhd_mask, sub_mask, params)
    return sub_ab, convolved_wzeros, sub_mask


def init_params(key, d, ci, chout, hidden=32, cmco_ci=16):
    ks = jax.random.split(key, 8)

    def lin(kw, kb, fan_in, fan_out):
        s = 1.0 / jnp.sqrt(fan_in)
        w = jax.random.uniform(kw, (fan_in, fan_out), jnp.float32, -s, s)
        b = jax.random.uniform(kb, (1, fan_out), jnp.float32, -s, s)
        return w, b

    w1, b1 = lin(ks[0], ks[1], d, hidden)
    w2, b2 = lin(ks[2], ks[3], hidden, hidden)
    w3, b3 = lin(ks[4], ks[5], hidden, cmco_ci)
    # wl rows follow PyTorch's flatten order of the (ci, cmco_ci) partial result:
    # row index = c * cmco_ci + w  (c-major).  Loading real nn.Linear weights
    # requires the usual (out,in) -> (in,out) transpose.
    wl, bl = lin(ks[6], ks[7], ci * cmco_ci, chout)
    return (w1, b1, w2, b2, w3, b3, wl, bl)


if __name__ == "__main__":
    # LieConv(chin=4, chout=8, nbhd=32, group=SE3) -> xyz_dim = 6 + 2*0 = 6
    bs, n, d = 2, 8, 6
    chin, chout = 4, 8
    nbhd, r = 32, 2.0

    key = jax.random.PRNGKey(0)
    k_ab, k_vals, k_noise, k_params = jax.random.split(key, 4)

    pairs_ab = jax.random.normal(k_ab, (bs, n, n, d), jnp.float32)
    inp_vals = jax.random.normal(k_vals, (bs, n, chin), jnp.float32)
    mask = jnp.ones((bs, n), dtype=bool).at[1, -1].set(False)

    params = init_params(k_params, d, chin, chout)

    sub_ab, convolved, sub_mask = lieconv_forward(
        pairs_ab, inp_vals, mask, params, nbhd=nbhd, r=r, key=k_noise)

    jax.block_until_ready(convolved)
    assert sub_ab.shape == (bs, n, n, d)
    assert convolved.shape == (bs, n, chout)
    assert convolved.dtype == jnp.float32
    assert sub_mask.shape == (bs, n)
    print("KERNEL_OK")
</pallas_src>

<mosaic_0001>
module attributes {stable_mosaic.version = 11 : i64} {
  func.func @lieconv_point_convolve_kernel(%arg0: i32, %arg1: i32, %arg2: memref<1x64x6xbf16, #tpu.memory_space<vmem>>, %arg3: memref<1x8x8x4xbf16, #tpu.memory_space<vmem>>, %arg4: memref<1x8x1xf32, #tpu.memory_space<vmem>>, %arg5: memref<6x32xbf16, #tpu.memory_space<vmem>>, %arg6: memref<1x32xf32, #tpu.memory_space<vmem>>, %arg7: memref<32x32xbf16, #tpu.memory_space<vmem>>, %arg8: memref<1x32xf32, #tpu.memory_space<vmem>>, %arg9: memref<32x16xbf16, #tpu.memory_space<vmem>>, %arg10: memref<1x16xf32, #tpu.memory_space<vmem>>, %arg11: memref<64x128xbf16, #tpu.memory_space<vmem>>, %arg12: memref<1x128xf32, #tpu.memory_space<vmem>>, %arg13: memref<1x8x128xbf16, #tpu.memory_space<vmem>>) attributes {dimension_semantics = [#tpu.dimension_semantics<parallel>, #tpu.dimension_semantics<parallel>], iteration_bounds = array<i64: 2, 1>, scalar_prefetch = 0 : i64, scratch_operands = 0 : i64, tpu.core_type = #tpu.core_type<tc>, window_params = [{transform_indices = @transform_0, window_bounds = array<i64: 1, 64, 6>}, {transform_indices = @transform_1, window_bounds = array<i64: 1, 8, 8, 4>}, {transform_indices = @transform_2, window_bounds = array<i64: 1, 8, 1>}, {pipeline_mode = #tpu.pipeline_mode<synchronous>, transform_indices = @transform_3, window_bounds = array<i64: 6, 32>}, {pipeline_mode = #tpu.pipeline_mode<synchronous>, transform_indices = @transform_4, window_bounds = array<i64: 1, 32>}, {pipeline_mode = #tpu.pipeline_mode<synchronous>, transform_indices = @transform_5, window_bounds = array<i64: 32, 32>}, {pipeline_mode = #tpu.pipeline_mode<synchronous>, transform_indices = @transform_6, window_bounds = array<i64: 1, 32>}, {pipeline_mode = #tpu.pipeline_mode<synchronous>, transform_indices = @transform_7, window_bounds = array<i64: 32, 16>}, {pipeline_mode = #tpu.pipeline_mode<synchronous>, transform_indices = @transform_8, window_bounds = array<i64: 1, 16>}, {pipeline_mode = #tpu.pipeline_mode<synchronous>, transform_indices = @transform_9, window_bounds = array<i64: 64, 128>}, {pipeline_mode = #tpu.pipeline_mode<synchronous>, transform_indices = @transform_10, window_bounds = array<i64: 1, 128>}, {transform_indices = @transform_11, window_bounds = array<i64: 1, 8, 128>}]} {
    %c0 = arith.constant 0 : index
    %c0_0 = arith.constant 0 : index
    %c0_1 = arith.constant 0 : index
    %0 = vector.load %arg2[%c0, %c0_0, %c0_1] : memref<1x64x6xbf16, #tpu.memory_space<vmem>>, vector<1x64x6xbf16>
    %1 = vector.shape_cast %0 : vector<1x64x6xbf16> to vector<64x6xbf16>
    %c0_2 = arith.constant 0 : index
    %c0_3 = arith.constant 0 : index
    %2 = vector.load %arg5[%c0_2, %c0_3] : memref<6x32xbf16, #tpu.memory_space<vmem>>, vector<6x32xbf16>
    %cst = arith.constant dense<0.000000e+00> : vector<64x32xf32>
    %3 = tpu.matmul %1, %2, %cst {dimension_numbers = #tpu.dot_dimension_numbers<[1], [0], [0], [1], [0, 0, 1, 1], [], []>} : vector<64x6xbf16>, vector<6x32xbf16>, vector<64x32xf32> -> vector<64x32xf32>
    %c0_4 = arith.constant 0 : index
    %c0_5 = arith.constant 0 : index
    %4 = vector.load %arg6[%c0_4, %c0_5] : memref<1x32xf32, #tpu.memory_space<vmem>>, vector<1x32xf32>
    %5 = vector.broadcast %4 : vector<1x32xf32> to vector<64x32xf32>
    %6 = arith.addf %3, %5 : vector<64x32xf32>
    %7 = arith.truncf %6 : vector<64x32xf32> to vector<64x32xbf16>
    %8 = arith.negf %7 : vector<64x32xbf16>
    %9 = math.exp %8 : vector<64x32xbf16>
    %cst_6 = arith.constant 1.000000e+00 : bf16
    %10 = vector.broadcast %cst_6 : bf16 to vector<64x32xbf16>
    %11 = arith.addf %10, %9 : vector<64x32xbf16>
    %12 = arith.divf %10, %11 : vector<64x32xbf16>
    %13 = arith.mulf %7, %12 : vector<64x32xbf16>
    %c0_7 = arith.constant 0 : index
    %c0_8 = arith.constant 0 : index
    %14 = vector.load %arg7[%c0_7, %c0_8] : memref<32x32xbf16, #tpu.memory_space<vmem>>, vector<32x32xbf16>
    %cst_9 = arith.constant dense<0.000000e+00> : vector<64x32xf32>
    %15 = tpu.matmul %13, %14, %cst_9 {dimension_numbers = #tpu.dot_dimension_numbers<[1], [0], [0], [1], [0, 0, 1, 1], [], []>} : vector<64x32xbf16>, vector<32x32xbf16>, vector<64x32xf32> -> vector<64x32xf32>
    %c0_10 = arith.constant 0 : index
    %c0_11 = arith.constant 0 : index
    %16 = vector.load %arg8[%c0_10, %c0_11] : memref<1x32xf32, #tpu.memory_space<vmem>>, vector<1x32xf32>
    %17 = vector.broadcast %16 : vector<1x32xf32> to vector<64x32xf32>
    %18 = arith.addf %15, %17 : vector<64x32xf32>
    %19 = arith.truncf %18 : vector<64x32xf32> to vector<64x32xbf16>
    %20 = arith.negf %19 : vector<64x32xbf16>
    %21 = math.exp %20 : vector<64x32xbf16>
    %cst_12 = arith.constant 1.000000e+00 : bf16
    %22 = vector.broadcast %cst_12 : bf16 to vector<64x32xbf16>
    %23 = arith.addf %22, %21 : vector<64x32xbf16>
    %24 = arith.divf %22, %23 : vector<64x32xbf16>
    %25 = arith.mulf %19, %24 : vector<64x32xbf16>
    %c0_13 = arith.constant 0 : index
    %c0_14 = arith.constant 0 : index
    %26 = vector.load %arg9[%c0_13, %c0_14] : memref<32x16xbf16, #tpu.memory_space<vmem>>, vector<32x16xbf16>
    %cst_15 = arith.constant dense<0.000000e+00> : vector<64x16xf32>
    %27 = tpu.matmul %25, %26, %cst_15 {dimension_numbers = #tpu.dot_dimension_numbers<[1], [0], [0], [1], [0, 0, 1, 1], [], []>} : vector<64x32xbf16>, vector<32x16xbf16>, vector<64x16xf32> -> vector<64x16xf32>
    %c0_16 = arith.constant 0 : index
    %c0_17 = arith.constant 0 : index
    %28 = vector.load %arg10[%c0_16, %c0_17] : memref<1x16xf32, #tpu.memory_space<vmem>>, vector<1x16xf32>
    %29 = vector.broadcast %28 : vector<1x16xf32> to vector<64x16xf32>
    %30 = arith.addf %27, %29 : vector<64x16xf32>
    %31 = arith.truncf %30 : vector<64x16xf32> to vector<64x16xbf16>
    %32 = arith.negf %31 : vector<64x16xbf16>
    %33 = math.exp %32 : vector<64x16xbf16>
    %cst_18 = arith.constant 1.000000e+00 : bf16
    %34 = vector.broadcast %cst_18 : bf16 to vector<64x16xbf16>
    %35 = arith.addf %34, %33 : vector<64x16xbf16>
    %36 = arith.divf %34, %35 : vector<64x16xbf16>
    %37 = arith.mulf %31, %36 : vector<64x16xbf16>
    %38 = vector.shape_cast %37 : vector<64x16xbf16> to vector<8x8x16xbf16>
    %39 = arith.extf %38 : vector<8x8x16xbf16> to vector<8x8x16xf32>
    %c0_19 = arith.constant 0 : index
    %c0_20 = arith.constant 0 : index
    %c0_21 = arith.constant 0 : index
    %c0_22 = arith.constant 0 : index
    %40 = vector.load %arg3[%c0_19, %c0_20, %c0_21, %c0_22] : memref<1x8x8x4xbf16, #tpu.memory_space<vmem>>, vector<1x8x8x4xbf16>
    %41 = vector.shape_cast %40 : vector<1x8x8x4xbf16> to vector<8x8x4xbf16>
    %42 = arith.extf %41 : vector<8x8x4xbf16> to vector<8x8x4xf32>
    %43 = vector.extract_strided_slice %42 {offsets = [0, 0, 0], sizes = [8, 8, 1], strides = [1, 1, 1]} : vector<8x8x4xf32> to vector<8x8x1xf32>
    %44 = vector.broadcast %43 : vector<8x8x1xf32> to vector<8x8x16xf32>
    %45 = arith.mulf %39, %44 : vector<8x8x16xf32>
    %cst_23 = arith.constant dense<0.000000e+00> : vector<8x16xf32>
    %46 = vector.multi_reduction <add>, %45, %cst_23 [1] : vector<8x8x16xf32> to vector<8x16xf32>
    %47 = vector.extract_strided_slice %42 {offsets = [0, 0, 1], sizes = [8, 8, 1], strides = [1, 1, 1]} : vector<8x8x4xf32> to vector<8x8x1xf32>
    %48 = vector.broadcast %47 : vector<8x8x1xf32> to vector<8x8x16xf32>
    %49 = arith.mulf %39, %48 : vector<8x8x16xf32>
    %cst_24 = arith.constant dense<0.000000e+00> : vector<8x16xf32>
    %50 = vector.multi_reduction <add>, %49, %cst_24 [1] : vector<8x8x16xf32> to vector<8x16xf32>
    %51 = vector.extract_strided_slice %42 {offsets = [0, 0, 2], sizes = [8, 8, 1], strides = [1, 1, 1]} : vector<8x8x4xf32> to vector<8x8x1xf32>
    %52 = vector.broadcast %51 : vector<8x8x1xf32> to vector<8x8x16xf32>
    %53 = arith.mulf %39, %52 : vector<8x8x16xf32>
    %cst_25 = arith.constant dense<0.000000e+00> : vector<8x16xf32>
    %54 = vector.multi_reduction <add>, %53, %cst_25 [1] : vector<8x8x16xf32> to vector<8x16xf32>
    %55 = vector.extract_strided_slice %42 {offsets = [0, 0, 3], sizes = [8, 8, 1], strides = [1, 1, 1]} : vector<8x8x4xf32> to vector<8x8x1xf32>
    %56 = vector.broadcast %55 : vector<8x8x1xf32> to vector<8x8x16xf32>
    %57 = arith.mulf %39, %56 : vector<8x8x16xf32>
    %cst_26 = arith.constant dense<0.000000e+00> : vector<8x16xf32>
    %58 = vector.multi_reduction <add>, %57, %cst_26 [1] : vector<8x8x16xf32> to vector<8x16xf32>
    %59 = tpu.concatenate %46, %50, %54, %58 in 1 : vector<8x16xf32>, vector<8x16xf32>, vector<8x16xf32>, vector<8x16xf32> -> vector<8x64xf32>
    %60 = arith.truncf %59 : vector<8x64xf32> to vector<8x64xbf16>
    %c0_27 = arith.constant 0 : index
    %c0_28 = arith.constant 0 : index
    %61 = vector.load %arg11[%c0_27, %c0_28] : memref<64x128xbf16, #tpu.memory_space<vmem>>, vector<64x128xbf16>
    %cst_29 = arith.constant dense<0.000000e+00> : vector<8x128xf32>
    %62 = tpu.matmul %60, %61, %cst_29 {dimension_numbers = #tpu.dot_dimension_numbers<[1], [0], [0], [1], [0, 0, 1, 1], [], []>} : vector<8x64xbf16>, vector<64x128xbf16>, vector<8x128xf32> -> vector<8x128xf32>
    %c0_30 = arith.constant 0 : index
    %c0_31 = arith.constant 0 : index
    %63 = vector.load %arg12[%c0_30, %c0_31] : memref<1x128xf32, #tpu.memory_space<vmem>>, vector<1x128xf32>
    %64 = vector.broadcast %63 : vector<1x128xf32> to vector<8x128xf32>
    %65 = arith.addf %62, %64 : vector<8x128xf32>
    %c0_32 = arith.constant 0 : index
    %c0_33 = arith.constant 0 : index
    %c0_34 = arith.constant 0 : index
    %66 = vector.load %arg4[%c0_32, %c0_33, %c0_34] : memref<1x8x1xf32, #tpu.memory_space<vmem>>, vector<1x8x1xf32>
    %67 = vector.shape_cast %66 : vector<1x8x1xf32> to vector<8x1xf32>
    %68 = vector.broadcast %67 : vector<8x1xf32> to vector<8x128xf32>
    %69 = arith.mulf %65, %68 : vector<8x128xf32>
    %70 = arith.truncf %69 : vector<8x128xf32> to vector<8x128xbf16>
    %c0_35 = arith.constant 0 : index
    %c0_36 = arith.constant 0 : index
    %c0_37 = arith.constant 0 : index
    %71 = vector.load %arg13[%c0_35, %c0_36, %c0_37] : memref<1x8x128xbf16, #tpu.memory_space<vmem>>, vector<1x8x128xbf16>
    %72 = vector.shape_cast %71 : vector<1x8x128xbf16> to vector<8x128xbf16>
    %73 = vector.shape_cast %70 : vector<8x128xbf16> to vector<1x8x128xbf16>
    tpu.vector_store %arg13[%c0_35, %c0_36, %c0_37], %73 {strides = array<i32>} : memref<1x8x128xbf16, #tpu.memory_space<vmem>>, vector<1x8x128xbf16>,
    return
  }
  func.func @transform_0(%arg0: i32, %arg1: i32) -> (i32, i32, i32) {
    %c0_i32 = arith.constant 0 : i32
    %c0_i32_0 = arith.constant 0 : i32
    return %arg0, %arg1, %c0_i32 : i32, i32, i32
  }
  func.func @transform_1(%arg0: i32, %arg1: i32) -> (i32, i32, i32, i32) {
    %c0_i32 = arith.constant 0 : i32
    %c0_i32_0 = arith.constant 0 : i32
    %c0_i32_1 = arith.constant 0 : i32
    return %arg0, %arg1, %c0_i32, %c0_i32_0 : i32, i32, i32, i32
  }
  func.func @transform_2(%arg0: i32, %arg1: i32) -> (i32, i32, i32) {
    %c0_i32 = arith.constant 0 : i32
    %c0_i32_0 = arith.constant 0 : i32
    return %arg0, %arg1, %c0_i32 : i32, i32, i32
  }
  func.func @transform_3(%arg0: i32, %arg1: i32) -> (i32, i32) {
    %c0_i32 = arith.constant 0 : i32
    %c0_i32_0 = arith.constant 0 : i32
    %c0_i32_1 = arith.constant 0 : i32
    return %c0_i32, %c0_i32_0 : i32, i32
  }
  func.func @transform_4(%arg0: i32, %arg1: i32) -> (i32, i32) {
    %c0_i32 = arith.constant 0 : i32
    %c0_i32_0 = arith.constant 0 : i32
    %c0_i32_1 = arith.constant 0 : i32
    return %c0_i32, %c0_i32_0 : i32, i32
  }
  func.func @transform_5(%arg0: i32, %arg1: i32) -> (i32, i32) {
    %c0_i32 = arith.constant 0 : i32
    %c0_i32_0 = arith.constant 0 : i32
    %c0_i32_1 = arith.constant 0 : i32
    return %c0_i32, %c0_i32_0 : i32, i32
  }
  func.func @transform_6(%arg0: i32, %arg1: i32) -> (i32, i32) {
    %c0_i32 = arith.constant 0 : i32
    %c0_i32_0 = arith.constant 0 : i32
    %c0_i32_1 = arith.constant 0 : i32
    return %c0_i32, %c0_i32_0 : i32, i32
  }
  func.func @transform_7(%arg0: i32, %arg1: i32) -> (i32, i32) {
    %c0_i32 = arith.constant 0 : i32
    %c0_i32_0 = arith.constant 0 : i32
    %c0_i32_1 = arith.constant 0 : i32
    return %c0_i32, %c0_i32_0 : i32, i32
  }
  func.func @transform_8(%arg0: i32, %arg1: i32) -> (i32, i32) {
    %c0_i32 = arith.constant 0 : i32
    %c0_i32_0 = arith.constant 0 : i32
    %c0_i32_1 = arith.constant 0 : i32
    return %c0_i32, %c0_i32_0 : i32, i32
  }
  func.func @transform_9(%arg0: i32, %arg1: i32) -> (i32, i32) {
    %c0_i32 = arith.constant 0 : i32
    %c0_i32_0 = arith.constant 0 : i32
    %c0_i32_1 = arith.constant 0 : i32
    return %c0_i32, %c0_i32_0 : i32, i32
  }
  func.func @transform_10(%arg0: i32, %arg1: i32) -> (i32, i32) {
    %c0_i32 = arith.constant 0 : i32
    %c0_i32_0 = arith.constant 0 : i32
    %c0_i32_1 = arith.constant 0 : i32
    return %c0_i32, %c0_i32_0 : i32, i32
  }
  func.func @transform_11(%arg0: i32, %arg1: i32) -> (i32, i32, i32) {
    %c0_i32 = arith.constant 0 : i32
    %c0_i32_0 = arith.constant 0 : i32
    return %arg0, %arg1, %c0_i32 : i32, i32, i32
  }
}

</mosaic_0001>

<bundles_post_ra>
// kernel: tpu_custom_call.1
= control target key start
LH: loop header
LB: loop body
LE: loop exit
PB: predicated region body
PF: predicated region fallthrough
CT: control target
= control target key end

     0   :  { %s2683_s0 = inlined_call_operand.vmem [shape: bf16[2,64,6], index: 0, kind: input, shape index: {}]   ;;  %s2684_s1 = inlined_call_operand.vmem [shape: bf16[2,8,8,4], index: 1, kind: input, shape index: {}]   ;;  %s2685_s2 = inlined_call_operand.vmem [shape: f32[2,8,1], index: 2, kind: input, shape index: {}]   ;;  %s2686_s3 = inlined_call_operand.vmem [shape: bf16[6,32], index: 3, kind: input, shape index: {}]   ;;  %s2687_s4 = inlined_call_operand.vmem [shape: f32[1,32], index: 4, kind: input, shape index: {}]   ;;  %s2688_s5 = inlined_call_operand.vmem [shape: bf16[32,32], index: 5, kind: input, shape index: {}]   ;;  %s2689_s6 = inlined_call_operand.vmem [shape: f32[1,32], index: 6, kind: input, shape index: {}]   ;;  %s2690_s7 = inlined_call_operand.vmem [shape: bf16[32,16], index: 7, kind: input, shape index: {}]   ;;  %s2691_s8 = inlined_call_operand.vmem [shape: f32[1,16], index: 8, kind: input, shape index: {}]   ;;  %s2692_s9 = inlined_call_operand.vmem [shape: bf16[64,128], index: 9, kind: input, shape index: {}]   ;;  %s2693_s10 = inlined_call_operand.vmem [shape: f32[1,128], index: 10, kind: input, shape index: {}]   ;;  %s2694_s11 = inlined_call_operand.hbm [shape: bf16[2,8,128], index: 11, kind: output, shape index: {}]  }
   0x1   :  { %2696 = sst [smem:[#allocation5_spill]] %s2683_s0 }
   0x2   :  { %2697 = sst [smem:[#allocation6_spill]] %s2684_s1 }
   0x3   :  { %16 = vsyncpa [#allocation3], 0 }
   0x4   :  { %18 = vsyncpa [#allocation3 + $0x1], 0  ;;  %s2167_s17 = smov 0   ;;  %s2169_s18 = smov 0  }
   0x5   :  { %s2171_s19 = smov 0   ;;  %s2173_s20 = smov 0  }
   0x6   :  { %s2175_s21 = smov 0   ;;  %s2177_s22 = smov 0  }
   0x7 LB: > { %s1649_s23 = sadd.s32 4294967295, %s2095_s22   ;;  %s1650_s24 = sadd.s32 4294967294, %s2095_s22   ;;  %s2095_s22 = sphi %s2177_s22, %s24_s22   ;;  %s2091_s21 = sphi %s2175_s21, %s2715_s21   ;;  %s2087_s20 = sphi %s2173_s20, %s2714_s20   ;;  %s2083_s19 = sphi %s2171_s19, %s2713_s19   ;;  %s2079_s18 = sphi %s2169_s18, %s2712_s18   ;;  %s2075_s17 = sphi %s2167_s17, %s2711_s17  }
   0x8   : > { %s36_s25 = sadd.s32 1, %s2091_s21  ;;  %s297_s26 = sadd.s32 1, %s2083_s19 }
   0x9   : > { %p38_p0 = scmp.ge.s32.totalorder %s36_s25, 2  ;;  %p307_p1 = scmp.ne.s32.totalorder %s2083_s19, %s2079_s18 }
   0xa   : > { %p308_p2 = scmp.eq.s32.totalorder %s1649_s23, 1  ;;  %p313_p3 = scmp.ne.s32.totalorder %s2079_s18, %s2075_s17 }
   0xb   : > { %s2717_s25 = smov (%p38_p0, %s36_s25), 0  ;;  %p314_p5 = scmp.eq.s32.totalorder %s1650_s24, 1 }
   0xc   : > { %p2207_p4 = por %p308_p2, %p307_p1  ;;  %s292_s28 = ssub.s32 %s2091_s21, %s2717_s25 }
   0xd   : > { %p1653_p6 = scmp.ge.s32.totalorder %s2095_s22, 1  ;;  %p295_p7 = scmp.eq.s32.totalorder %s292_s28, 0 }
   0xe   : > { %p2214_p8 = por %p314_p5, %p313_p3  ;;  %p392_p9 = scmp.lt.s32.totalorder %s2095_s22, 3 }
   0xf   : > { %s2220_s30 = scalar_select %p295_p7, %s2083_s19, %s297_s26  }
  0x10   : > { %p393_p10 = pnand %p1653_p6, %p392_p9 }
  0x11   : > { %v489_v0 = vld [vmem:[%s2686_s3] sm:$0x7] (!%p393_p10)  ;;  %vm530_vm0 = vcmask (!%p393_p10), 1042432   ;;  %p453_p11 = scmp.lt.s32.totalorder (!%p393_p10), %s2087_s20, 1  ;;  %vm517_vm1 = vcmask (!%p393_p10), 48128   ;;  %s2700_s0 = sld [smem:[#allocation5_spill]] (!%p393_p10) }
  0x12   : > { %396 = sbr.rel (%p393_p10) target bundleno = 1217 (0x4c1), region = 64  ;;  %1802 = vmatprep.subr.msk.bf16.mxu0 (!%p393_p10), %vm530_vm0, %v489_v0  ;;  %v532_v1 = vsel (!%p393_p10), %vm530_vm0, %v489_v0, 0  ;;  %v1961_v6 = vld [vmem:[%s2688_s5] sm:$0xff] (!%p393_p10)   ;;  %v1962_v7 = vld [vmem:[%s2688_s5 + $0x8] sm:$0xff] (!%p393_p10)   ;;  %vm658_vm2 = vcmask (!%p393_p10), 261120   ;;  %s2701_s1 = sld [smem:[#allocation6_spill]] (!%p393_p10) }
  0x13   : > { %1757 = vmatpush3.bf16.msra.mxu0 (!%p393_p10), %v532_v1  ;;  %1766 = vmatprep.subr.bf16.mxu1 (!%p393_p10), %v1961_v6  ;;  %v1660_v9 = vld [vmem:[%s2687_s4] ss:$0 sm:$0xff] (!%p393_p10)  ;;  %v1964_v54 = vld [vmem:[%s2690_s7 + $0x8] sm:$0xff] (!%p393_p10)   ;;  %v2097_v55 = vmov (!%p393_p10), 2   ;;  %v2098_v58 = vmov (!%p393_p10), 1   ;;  %vm1008_vm3 = vcmask (!%p393_p10), 130048  }
  0x14   : > { %1767 = vmatpush3.bf16.msra.mxu1 (!%p393_p10), %v1961_v6  ;;  %v1963_v53 = vld [vmem:[%s2690_s7] sm:$0xff] (!%p393_p10)   ;;  %1878 = vset.pattern.permute.xlu1 (!%p393_p10), %v2097_v55  ;;  %v2099_v6 = vmov (!%p393_p10), 3   ;;  %vm1361_vm4 = vcmask (!%p393_p10), 1041409   ;;  %vm1363_vm5 = vcmask (!%p393_p10), 1042434   ;;  %vm1365_vm6 = vcmask (!%p393_p10), 1043459   ;;  %s449_s26 = sand.u32 (!%p393_p10), 1, %s2079_s18  }
  0x15   : > { %1768 = vmatprep.subr.bf16.mxu1 (!%p393_p10), %v1962_v7  ;;  %1778 = vmatprep.subr.bf16.mxu0 (!%p393_p10), %v1963_v53  ;;  %vm1367_vm7 = vcmask (!%p393_p10), 1044484   ;;  %vm1369_vm8 = vcmask (!%p393_p10), 1045509   ;;  %vm1371_vm9 = vcmask (!%p393_p10), 1046534   ;;  %vm1373_vm10 = vcmask (!%p393_p10), 1047559   ;;  %s1654_s28 = sshll.u32 (!%p393_p10), %s449_s26, 2  ;;  %s1710_s13 = sshll.u32 (!%p393_p10), %s2087_s20, 6 }
  0x16   : > { %1867 = vset.pattern.permute.xlu0 (!%p393_p10), %v2098_v58  ;;  %vm2104_vm11 = vmmov (!%p393_p10), 0   ;;  %vm1432_vm12 = vcmask (!%p393_p10), 392192   ;;  %vm1474_vm13 = vcmask (!%p393_p10), 523264  }
  0x18   : > { %1769 = vmatpush3.bf16.msra.mxu1 (!%p393_p10), %v1962_v7 }
  0x19   : > { %s2227_s14 = scalar_select %p453_p11, %s2087_s20, 1 }
  0x1a   : > { %s2106_s20 = smov [#allocation2]  }
  0x1b   : > { %s1713_s15 = sshll.u32 %s2227_s14, 5  ;;  %s1659_s12 = sshll.u32 %s2227_s14, 3 }
  0x1c   : > { %s460_s24 = scalar_lea.vmem %s2700_s0, %s1713_s15  ;;  %s470_s23 = scalar_lea.vmem %s2701_s1, %s1713_s15 }
  0x1d   : > { %v1957_v2 = vld [vmem:[%s460_s24] sm:$0xff]   ;;  %v1958_v3 = vld [vmem:[%s460_s24 + $0x8] sm:$0xff]   ;;  %v1959_v4 = vld [vmem:[%s460_s24 + $0x10] sm:$0xff]   ;;  %s478_s16 = scalar_lea.vmem %s2685_s2, %s1659_s12  ;;  %s2103_s15 = smov 16  }
  0x1e   : > { %1758 = vmatprep.mubr.msk.bf16.mxu0 %vm517_vm1, %v1957_v2  ;;  %v1960_v5 = vld [vmem:[%s460_s24 + $0x18] sm:$0xff]   ;;  %v1716_v56 = vld [vmem:[%s470_s23] sm:$0xff]   ;;  %v1731_v57 = vld [vmem:[%s470_s23 + $0x8] sm:$0xff]   ;;  %s2105_s24 = smov 48   ;;  %s2636_s0 = scalar_lea.hbm %s2694_s11, %s1710_s13 }
  0x1f   : > { %1759 = vmatmul.mubr.msk.bf16.vlgmr.msra.gmra.mrb[0].mxu0 %vm517_vm1, %v1958_v3  ;;  %v1717_v59 = vunpack.c.l.bf16 %v1716_v56  ;;  %v1718_v60 = vunpack.c.h.bf16 %v1716_v56  ;;  %v1721_v61 = vunpack.c.l.bf16 %v1731_v57  ;;  %v1722_v62 = vunpack.c.h.bf16 %v1731_v57  ;;  %v1732_v0 = vld [vmem:[%s470_s23 + $0x10] sm:$0xff]   ;;  %v1965_v57 = vld [vmem:[%s2692_s9] sm:$0xff]   ;;  %s1528_s12 = scalar_lea.sflag [#allocation3], %s449_s26 }
  0x20   : > { %1762 = vmatprep.mubr.msk.bf16.mxu0 %vm517_vm1, %v1959_v4  ;;  %1779 = vmatpush3.bf16.msra.mxu0 %v1963_v53  ;;  %v1725_v2 = vunpack.c.l.bf16 %v1732_v0  ;;  %v1726_v3 = vunpack.c.h.bf16 %v1732_v0 }
  0x21   : > { %1780 = vmatprep.subr.bf16.mxu0 %v1964_v54  ;;  %v1879_v63 = vpack.i.bf16 %v1718_v60, %v1717_v59  ;;  %v1884_v1 = vpack.i.bf16 %v1722_v62, %v1721_v61  ;;  %v1966_v59 = vld [vmem:[%s2692_s9 + $0x8] sm:$0xff]   ;;  %v1967_v61 = vld [vmem:[%s2692_s9 + $0x10] sm:$0xff]  }
  0x22   : > { %v1896_v4 = vpack.i.bf16 %v1726_v3, %v1725_v2 }
  0x23   : > { %1880 = vperm.xlu1 %1878, %v1879_v63   ;;  %1869 = vperm.xlu0 %1867, %v1879_v63  }
  0x24   : > { %1781 = vmatpush3.bf16.msra.mxu0 %v1964_v54 }
  0x27   : > { %1763 = vmatmul.mubr.msk.bf16.gmra.mrb[4].mxu0 %vm517_vm1, %v1960_v5  ;;  %1885 = vperm.xlu1 %1878, %v1884_v1   ;;  %v1733_v5 = vld [vmem:[%s470_s23 + $0x18] sm:$0xff]   ;;  %s2102_s23 = smov 32  }
  0x28   : > { %1874 = vperm.xlu0 %1867, %v1884_v1   ;;  %v1729_v7 = vunpack.c.l.bf16 %v1733_v5 }
  0x2b   : > { %1895 = vset.pattern.permute.xlu1 %v2098_v58 }
  0x2c   : > { %1889 = vset.pattern.permute.xlu0 %v2099_v6  ;;  %1897 = vperm.xlu1 %1895, %v1896_v4  }
  0x2d   : > { %1891 = vperm.xlu0 %1889, %v1879_v63  }
  0x30   : > { %1901 = vset.pattern.permute.xlu1 %v2099_v6 }
  0x31   : > { %1907 = vset.pattern.permute.xlu0 %v2097_v55  ;;  %1903 = vperm.xlu1 %1901, %v1884_v1  }
  0x32   : > { %1909 = vperm.xlu0 %1907, %v1896_v4  }
  0x35   : > { %1913 = vset.pattern.permute.xlu1 %v2098_v58  ;;  %v2695_v58 = vmov 0.0  }
  0x36   : > { %1790 = vmatprep.subr.bf16.mxu1 %v2695_v58 }
  0xa2   : > { %v2266_v56 = vpop.permute.xlu1 %1880 }
  0xa6   : > { %v2276_v60 = vpop.permute.xlu1 %1885 }
  0xf2   : > { %v1760_v8 = vpop.f32.mrb[0].mxu0 }
  0xf3   : > { %v568_v10 = vpop.f32.mrb[1].mxu0  ;;  %v577_v12 = vadd.f32 %v1760_v8, %v1660_v9  ;;  %v1730_v8 = vunpack.c.h.bf16 %v1733_v5  ;;  %v2286_v5 = vpop.permute.xlu1 %1897 }
  0xf4   : > { %v1761_v11 = vpop.f32.mrb[2].mxu0  ;;  %v569_v15 = vadd.f32 %v1660_v9, %v568_v10  ;;  %v2100_v10 = vmov 0  }
  0xf5   : > { %v580_v13 = vadd.f32 %v1761_v11, %v1660_v9  ;;  %v571_v14 = vpop.f32.mrb[3].mxu0 }
  0xf6   : > { %v572_v16 = vadd.f32 %v1660_v9, %v571_v14 }
  0xf7   : > { %v600_v17 = vpack.c.bf16 %v580_v13, %v577_v12  ;;  %v1673_v12 = vld [vmem:[%s2689_s6] ss:$0 sm:$0xff] }
  0xf8   : > { %v599_v18 = vpack.c.bf16 %v572_v16, %v569_v15 }
  0xf9   : > { %v1670_v19 = vmul.bf16 3216621497, %v600_v17 }
  0xfa   : > { %v1669_v20 = vmul.bf16 3216621497, %v599_v18  ;;  %v1764_v21 = vpop.f32.mrb[4].mxu0 }
  0xfb   : > { %1969 = vpow.bf16 %v1670_v19  ;;  %v584_v22 = vpop.f32.mrb[5].mxu0  ;;  %v593_v24 = vadd.f32 %v1764_v21, %v1660_v9 }
  0xfc   : > { %1971 = vpow.bf16 %v1669_v20  ;;  %v1765_v23 = vpop.f32.mrb[6].mxu0  ;;  %v585_v27 = vadd.f32 %v1660_v9, %v584_v22 }
  0xfd   : > { %v596_v25 = vadd.f32 %v1765_v23, %v1660_v9  ;;  %v587_v26 = vpop.f32.mrb[7].mxu0 }
  0xfe   : > { %v588_v28 = vadd.f32 %v1660_v9, %v587_v26  ;;  %v1925_v9 = vpack.i.bf16 %v1730_v8, %v1729_v7  ;;  %v2288_v8 = vpop.permute.xlu0 %1869 }
  0xff   : > { %v602_v29 = vpack.c.bf16 %v596_v25, %v593_v24 }
 0x100   : > { %v601_v30 = vpack.c.bf16 %v588_v28, %v585_v27  ;;  %1926 = vperm.xlu0 %1907, %v1925_v9   ;;  %1915 = vperm.xlu1 %1913, %v1925_v9  }
 0x101   : > { %v1672_v31 = vmul.bf16 3216621497, %v602_v29 }
 0x102   : > { %v1671_v32 = vmul.bf16 3216621497, %v601_v30 }
 0x103   : > { %1973 = vpow.bf16 %v1672_v31 }
 0x104   : > { %1975 = vpow.bf16 %v1671_v32  ;;  %1935 = vset.pattern.permute.xlu0 %v2100_v10  ;;  %1919 = vset.pattern.permute.xlu1 %v2099_v6 }
 0x105   : > { %1937 = vperm.xlu0 %1935, %v1879_v63   ;;  %1921 = vperm.xlu1 %1919, %v1896_v4   ;;  %v1684_v63 = vld [vmem:[%s2691_s8] ss:$0 sm:$0xff] }
 0x106   : > { %v1970_v33 = vpop.eup %1969 }
 0x107   : > { %v1972_v34 = vpop.eup %1971  ;;  %v620_v35 = vadd.bf16 1065369472, %v1970_v33 }
 0x108   : > { %v619_v36 = vadd.bf16 1065369472, %v1972_v34 }
 0x109   : > { %1977 = vrcp.bf16 %v620_v35  ;;  %1953 = vperm.xlu0 %1935, %v1925_v9   ;;  %1931 = vperm.xlu1 %1919, %v1925_v9  }
 0x10a   : > { %1979 = vrcp.bf16 %v619_v36 }
 0x10d   : > { %1941 = vset.pattern.permute.xlu1 %v2100_v10 }
 0x10e   : > { %v1974_v37 = vpop.eup %1973  ;;  %1943 = vperm.xlu1 %1941, %v1884_v1  }
 0x10f   : > { %v1976_v38 = vpop.eup %1975  ;;  %v622_v39 = vadd.bf16 1065369472, %v1974_v37 }
 0x110   : > { %v621_v40 = vadd.bf16 1065369472, %v1976_v38 }
 0x111   : > { %1981 = vrcp.bf16 %v622_v39 }
 0x112   : > { %1983 = vrcp.bf16 %v621_v40  ;;  %1948 = vperm.xlu1 %1941, %v1896_v4  }
 0x114   : > { %v1978_v41 = vpop.eup %1977 }
 0x115   : > { %v1980_v42 = vpop.eup %1979  ;;  %v626_v43 = vmul.bf16 1065369472, %v1978_v41 }
 0x116   : > { %v624_v44 = vmul.bf16 1065369472, %v1980_v42 }
 0x117   : > { %v632_v46 = vmul.bf16 %v626_v43, %v600_v17 }
 0x118   : > { %v631_v45 = vmul.bf16 %v624_v44, %v599_v18 }
 0x11a   : > { %1770 = vmatprep.mubr.msk.bf16.mxu1 %vm658_vm2, %v631_v45 }
 0x11b   : > { %1771 = vmatmul.mubr.msk.bf16.vlgmr.msra.gmra.mrb[0].mxu1 %vm658_vm2, %v632_v46 }
 0x11c   : > { %v1982_v47 = vpop.eup %1981  ;;  %1791 = vmatpush3.bf16.msra.mxu1 %v1965_v57 }
 0x11d   : > { %v1984_v48 = vpop.eup %1983  ;;  %v630_v49 = vmul.bf16 1065369472, %v1982_v47  ;;  %1792 = vmatprep.subr.bf16.mxu1 %v2695_v58 }
 0x11e   : > { %v628_v50 = vmul.bf16 1065369472, %v1984_v48 }
 0x11f   : > { %v634_v52 = vmul.bf16 %v630_v49, %v602_v29 }
 0x120   : > { %v633_v51 = vmul.bf16 %v628_v50, %v601_v30  ;;  %1793 = vmatpush3.bf16.msra.mxu1 %v1966_v59 }
 0x121   : > { %1794 = vmatprep.subr.bf16.mxu1 %v2695_v58 }
 0x122   : > { %1774 = vmatprep.mubr.msk.bf16.mxu1 %vm658_vm2, %v633_v51 }
 0x123   : > { %1775 = vmatmul.mubr.msk.bf16.gmra.mrb[4].mxu1 %vm658_vm2, %v634_v52 }
 0x124   : > { %1795 = vmatpush3.bf16.msra.mxu1 %v1967_v61 }
 0x125   : > { %1796 = vmatprep.subr.bf16.mxu1 %v2695_v58 }
 0x1ee   : > { %v1772_v11 = vpop.f32.mrb[0].mxu1 }
 0x1ef   : > { %v705_v13 = vpop.f32.mrb[1].mxu1  ;;  %v714_v15 = vadd.f32 %v1772_v11, %v1673_v12 }
 0x1f0   : > { %v1773_v14 = vpop.f32.mrb[2].mxu1  ;;  %v706_v18 = vadd.f32 %v1673_v12, %v705_v13 }
 0x1f1   : > { %v717_v16 = vadd.f32 %v1773_v14, %v1673_v12  ;;  %v708_v17 = vpop.f32.mrb[3].mxu1 }
 0x1f2   : > { %v709_v19 = vadd.f32 %v1673_v12, %v708_v17  ;;  %v2298_v17 = vpop.permute.xlu0 %1874 }
 0x1f3   : > { %v737_v20 = vpack.c.bf16 %v717_v16, %v714_v15  ;;  %v2296_v15 = vpop.permute.xlu1 %1903  ;;  %v1876_v57 = vunpack.i.l.bf16 %v2298_v17 }
 0x1f4   : > { %v736_v21 = vpack.c.bf16 %v709_v19, %v706_v18 }
 0x1f5   : > { %v1681_v22 = vmul.bf16 3216621497, %v737_v20 }
 0x1f6   : > { %v1680_v23 = vmul.bf16 3216621497, %v736_v21  ;;  %v1776_v24 = vpop.f32.mrb[4].mxu1 }
 0x1f7   : > { %1985 = vpow.bf16 %v1681_v22  ;;  %v721_v25 = vpop.f32.mrb[5].mxu1  ;;  %v730_v27 = vadd.f32 %v1776_v24, %v1673_v12 }
 0x1f8   : > { %1987 = vpow.bf16 %v1680_v23  ;;  %v1777_v26 = vpop.f32.mrb[6].mxu1  ;;  %v722_v30 = vadd.f32 %v1673_v12, %v721_v25 }
 0x1f9   : > { %v733_v28 = vadd.f32 %v1777_v26, %v1673_v12  ;;  %v724_v29 = vpop.f32.mrb[7].mxu1 }
 0x1fa   : > { %v725_v31 = vadd.f32 %v1673_v12, %v724_v29 }
 0x1fb   : > { %v739_v32 = vpack.c.bf16 %v733_v28, %v730_v27  ;;  %v2306_v27 = vpop.permute.xlu1 %1915  ;;  %v2308_v28 = vpop.permute.xlu0 %1891 }
 0x1fc   : > { %v738_v33 = vpack.c.bf16 %v725_v31, %v722_v30  ;;  %v1894_v59 = vunpack.i.h.bf16 %v2308_v28 }
 0x1fd   : > { %v1683_v34 = vmul.bf16 3216621497, %v739_v32 }
 0x1fe   : > { %v1682_v35 = vmul.bf16 3216621497, %v738_v33 }
 0x1ff   : > { %1989 = vpow.bf16 %v1683_v34  ;;  %v2312_v34 = vpop.permute.xlu0 %1909 }
 0x200   : > { %1991 = vpow.bf16 %v1682_v35 }
 0x202   : > { %v1986_v36 = vpop.eup %1985 }
 0x203   : > { %v1988_v37 = vpop.eup %1987  ;;  %v757_v38 = vadd.bf16 1065369472, %v1986_v36 }
 0x204   : > { %v756_v39 = vadd.bf16 1065369472, %v1988_v37  ;;  %v2316_v37 = vpop.permute.xlu0 %1926 }
 0x205   : > { %1993 = vrcp.bf16 %v757_v38 }
 0x206   : > { %1995 = vrcp.bf16 %v756_v39 }
 0x20a   : > { %v1990_v40 = vpop.eup %1989 }
 0x20b   : > { %v1992_v41 = vpop.eup %1991  ;;  %v759_v42 = vadd.bf16 1065369472, %v1990_v40 }
 0x20c   : > { %v758_v43 = vadd.bf16 1065369472, %v1992_v41  ;;  %v1883_v41 = vunpack.i.h.bf16 %v2266_v56 }
 0x20d   : > { %1997 = vrcp.bf16 %v759_v42  ;;  %v1882_v42 = vunpack.i.l.bf16 %v2266_v56 }
 0x20e   : > { %1999 = vrcp.bf16 %v758_v43  ;;  %v1888_v43 = vunpack.i.h.bf16 %v2276_v60 }
 0x210   : > { %v1994_v44 = vpop.eup %1993 }
 0x211   : > { %v1996_v45 = vpop.eup %1995  ;;  %v763_v46 = vmul.bf16 1065369472, %v1994_v44  ;;  %v1887_v44 = vunpack.i.l.bf16 %v2276_v60  ;;  %v1893_v60 = vunpack.i.l.bf16 %v2308_v28 }
 0x212   : > { %v761_v47 = vmul.bf16 1065369472, %v1996_v45  ;;  %v1900_v45 = vunpack.i.h.bf16 %v2286_v5 }
 0x213   : > { %v769_v49 = vmul.bf16 %v763_v46, %v737_v20  ;;  %v1899_v46 = vunpack.i.l.bf16 %v2286_v5 }
 0x214   : > { %v768_v48 = vmul.bf16 %v761_v47, %v736_v21  ;;  %v1872_v47 = vunpack.i.h.bf16 %v2288_v8 }
 0x216   : > { %1782 = vmatprep.mubr.msk.bf16.mxu0 %vm658_vm2, %v768_v48  ;;  %v1871_v48 = vunpack.i.l.bf16 %v2288_v8 }
 0x217   : > { %1783 = vmatmul.mubr.msk.bf16.vlgmr.msra.gmra.mrb[8].mxu0 %vm658_vm2, %v769_v49 }
 0x218   : > { %v1998_v50 = vpop.eup %1997 }
 0x219   : > { %v2000_v51 = vpop.eup %1999  ;;  %v767_v52 = vmul.bf16 1065369472, %v1998_v50  ;;  %v1906_v50 = vunpack.i.h.bf16 %v2296_v15 }
 0x21a   : > { %v765_v53 = vmul.bf16 1065369472, %v2000_v51  ;;  %v1905_v51 = vunpack.i.l.bf16 %v2296_v15 }
 0x21b   : > { %v771_v55 = vmul.bf16 %v767_v52, %v739_v32  ;;  %v1877_v52 = vunpack.i.h.bf16 %v2298_v17 }
 0x21c   : > { %v770_v54 = vmul.bf16 %v765_v53, %v738_v33  ;;  %v2310_v33 = vpop.permute.xlu1 %1921 }
 0x21e   : > { %1786 = vmatprep.mubr.msk.bf16.mxu0 %vm658_vm2, %v770_v54  ;;  %v2331_v54 = vpop.permute.xlu0 %1937 }
 0x21f   : > { %1787 = vmatmul.mubr.msk.bf16.gmra.mrb[12].mxu0 %vm658_vm2, %v771_v55 }
 0x220   : > { %v2314_v36 = vpop.permute.xlu1 %1931 }
 0x224   : > { %v2329_v53 = vpop.permute.xlu1 %1943 }
 0x2ea   : > { %v1784_v62 = vpop.f32.mrb[8].mxu0 }
 0x2eb   : > { %v841_v0 = vpop.f32.mrb[9].mxu0  ;;  %v850_v2 = vadd.f32 %v1784_v62, %v1684_v63  ;;  %v1918_v62 = vunpack.i.h.bf16 %v2306_v27 }
 0x2ec   : > { %v1785_v1 = vpop.f32.mrb[10].mxu0  ;;  %v842_v6 = vadd.f32 %v1684_v63, %v841_v0  ;;  %v1934_v0 = vunpack.i.h.bf16 %v2314_v36 }
 0x2ed   : > { %v853_v3 = vadd.f32 %v1785_v1, %v1684_v63  ;;  %v844_v4 = vpop.f32.mrb[11].mxu0 }
 0x2ee   : > { %v845_v7 = vadd.f32 %v1684_v63, %v844_v4 }
 0x2ef   : > { %v2290_v9 = vpack.c.bf16 %v853_v3, %v850_v2  ;;  %v1933_v2 = vunpack.i.l.bf16 %v2314_v36 }
 0x2f0   : > { %v2292_v10 = vpack.c.bf16 %v845_v7, %v842_v6  ;;  %v1924_v7 = vunpack.i.h.bf16 %v2310_v33 }
 0x2f1   : > { %v1692_v11 = vmul.bf16 3216621497, %v2290_v9 }
 0x2f2   : > { %v1691_v12 = vmul.bf16 3216621497, %v2292_v10  ;;  %v1788_v13 = vpop.f32.mrb[12].mxu0 }
 0x2f3   : > { %2001 = vpow.bf16 %v1692_v11  ;;  %v857_v14 = vpop.f32.mrb[13].mxu0  ;;  %v866_v18 = vadd.f32 %v1788_v13, %v1684_v63  ;;  %v1923_v11 = vunpack.i.l.bf16 %v2310_v33  ;;  %v2347_v13 = vpop.permute.xlu0 %1953 }
 0x2f4   : > { %2003 = vpow.bf16 %v1691_v12  ;;  %v1789_v16 = vpop.f32.mrb[14].mxu0  ;;  %v858_v21 = vadd.f32 %v1684_v63, %v857_v14  ;;  %v1912_v12 = vunpack.i.h.bf16 %v2312_v34 }
 0x2f5   : > { %v869_v19 = vadd.f32 %v1789_v16, %v1684_v63  ;;  %v860_v20 = vpop.f32.mrb[15].mxu0 }
 0x2f6   : > { %v861_v22 = vadd.f32 %v1684_v63, %v860_v20  ;;  %v1917_v63 = vunpack.i.l.bf16 %v2306_v27 }
 0x2f7   : > { %v2300_v23 = vpack.c.bf16 %v869_v19, %v866_v18  ;;  %v1929_v18 = vunpack.i.h.bf16 %v2316_v37  ;;  %v2351_v19 = vpop.permute.xlu1 %1948 }
 0x2f8   : > { %v2302_v24 = vpack.c.bf16 %v861_v22, %v858_v21 }
 0x2f9   : > { %v1694_v25 = vmul.bf16 3216621497, %v2300_v23 }
 0x2fa   : > { %v1693_v26 = vmul.bf16 3216621497, %v2302_v24 }
 0x2fb   : > { %2005 = vpow.bf16 %v1694_v25 }
 0x2fc   : > { %2007 = vpow.bf16 %v1693_v26 }
 0x2fe   : > { %v2002_v29 = vpop.eup %2001 }
 0x2ff   : > { %v2004_v30 = vpop.eup %2003  ;;  %v893_v31 = vadd.bf16 1065369472, %v2002_v29 }
 0x300   : > { %v892_v32 = vadd.bf16 1065369472, %v2004_v30 }
 0x301   : > { %2009 = vrcp.bf16 %v893_v31 }
 0x302   : > { %2011 = vrcp.bf16 %v892_v32 }
 0x306   : > { %v2006_v35 = vpop.eup %2005 }
 0x307   : > { %v2008_v38 = vpop.eup %2007  ;;  %v895_v39 = vadd.bf16 1065369472, %v2006_v35 }
 0x308   : > { %v894_v40 = vadd.bf16 1065369472, %v2008_v38 }
 0x309   : > { %2013 = vrcp.bf16 %v895_v39 }
 0x30a   : > { %2015 = vrcp.bf16 %v894_v40 }
 0x30c   : > { %v2010_v49 = vpop.eup %2009 }
 0x30d   : > { %v2012_v55 = vpop.eup %2011  ;;  %v899_v56 = vmul.bf16 1065369472, %v2010_v49 }
 0x30e   : > { %v897_v61 = vmul.bf16 1065369472, %v2012_v55 }
 0x30f   : > { %v905_v1 = vmul.bf16 %v899_v56, %v2290_v9  ;;  %v1911_v9 = vunpack.i.l.bf16 %v2312_v34 }
 0x310   : > { %v904_v6 = vmul.bf16 %v897_v61, %v2292_v10  ;;  %v1928_v10 = vunpack.i.l.bf16 %v2316_v37 }
 0x311   : > { %v1697_v14 = vcombine.low %v905_v1, %v905_v1  ;;  %v1698_v16 = vcombine.high %v905_v1, %v905_v1 }
 0x312   : > { %v1695_v20 = vcombine.low %v904_v6, %v904_v6  ;;  %v1696_v21 = vcombine.high %v904_v6, %v904_v6 }
 0x313   : > { %v2355_v25 = vunpack.c.l.bf16 %v1697_v14  ;;  %v2357_v26 = vunpack.c.l.bf16 %v1698_v16 }
 0x314   : > { %v2014_v31 = vpop.eup %2013  ;;  %v2361_v32 = vunpack.c.l.bf16 %v1695_v20  ;;  %v2363_v35 = vunpack.c.l.bf16 %v1696_v21 }
 0x315   : > { %v2016_v40 = vpop.eup %2015  ;;  %v903_v49 = vmul.bf16 1065369472, %v2014_v31  ;;  %v1195_v55 = vmul.f32 %v1887_v44, %v2355_v25  ;;  %v1196_v56 = vmul.f32 %v1888_v43, %v2357_v26  ;;  %v1291_v16 = vmul.f32 %v1905_v51, %v2355_v25 }
 0x316   : > { %v901_v1 = vmul.bf16 1065369472, %v2016_v40  ;;  %v1193_v6 = vmul.f32 %v1882_v42, %v2361_v32  ;;  %v1194_v14 = vmul.f32 %v1883_v41, %v2363_v35  ;;  %v1097_v31 = vmul.f32 %v1871_v48, %v2361_v32 }
 0x317   : > { %v907_v20 = vmul.bf16 %v903_v49, %v2300_v23  ;;  %v1215_v21 = vsel %vm1008_vm3, %v1195_v55, 0.0  ;;  %v1222_v58 = vsel %vm1008_vm3, %v1196_v56, 0.0  ;;  %v1098_v23 = vmul.f32 %v1872_v47, %v2363_v35 }
 0x318   : > { %v906_v44 = vmul.bf16 %v901_v1, %v2302_v24  ;;  %v1201_v43 = vsel %vm1008_vm3, %v1193_v6, 0.0  ;;  %v1208_v40 = vsel %vm1008_vm3, %v1194_v14, 0.0  ;;  %v1216_v39 = vrot.slane %v1215_v21, 4 }
 0x319   : > { %v1701_v42 = vcombine.low %v907_v20, %v907_v20  ;;  %v1202_v61 = vrot.slane %v1201_v43, 4  ;;  %v1209_v41 = vrot.slane %v1208_v40, 4  ;;  %v1223_v56 = vrot.slane %v1222_v58, 4 }
 0x31a   : > { %v1699_v51 = vcombine.low %v906_v44, %v906_v44  ;;  %v1700_v49 = vcombine.high %v906_v44, %v906_v44  ;;  %v1217_v55 = vadd.f32 %v1216_v39, %v1215_v21  ;;  %v1702_v30 = vcombine.high %v907_v20, %v907_v20 }
 0x31b   : > { %v2383_v48 = vunpack.c.l.bf16 %v1701_v42  ;;  %v1203_v24 = vadd.f32 %v1202_v61, %v1201_v43  ;;  %v1210_v1 = vadd.f32 %v1209_v41, %v1208_v40  ;;  %v1224_v22 = vadd.f32 %v1223_v56, %v1222_v58 }
 0x31c   : > { %v2385_v6 = vunpack.c.l.bf16 %v1699_v51  ;;  %v2387_v14 = vunpack.c.l.bf16 %v1700_v49  ;;  %v1218_v38 = vrot.slane %v1217_v55, 2  ;;  %v1105_v8 = vsel %vm1008_vm3, %v1097_v31, 0.0 }
 0x31d   : > { %v1204_v29 = vrot.slane %v1203_v24, 2  ;;  %v1211_v3 = vrot.slane %v1210_v1, 2  ;;  %v1112_v47 = vsel %vm1008_vm3, %v1098_v23, 0.0  ;;  %v1225_v39 = vrot.slane %v1224_v22, 2 }
 0x31e   : > { %v1219_v44 = vadd.f32 %v1218_v38, %v1217_v55  ;;  %v1101_v20 = vmul.f32 %v1899_v46, %v2385_v6  ;;  %v1102_v61 = vmul.f32 %v1900_v45, %v2387_v14  ;;  %v1106_v40 = vrot.slane %v1105_v8, 4 }
 0x31f   : > { %v1205_v21 = vadd.f32 %v1204_v29, %v1203_v24  ;;  %v1212_v43 = vadd.f32 %v1211_v3, %v1210_v1  ;;  %v1113_v58 = vrot.slane %v1112_v47, 4  ;;  %v1226_v41 = vadd.f32 %v1225_v39, %v1224_v22 }
 0x320   : > { %v1220_v42 = vrot.slane %v1219_v44, 1  ;;  %v1133_v31 = vsel %vm1008_vm3, %v1101_v20, 0.0  ;;  %v1140_v23 = vsel %vm1008_vm3, %v1102_v61, 0.0  ;;  %v2399_v56 = vunpack.c.l.bf16 %v1702_v30 }
 0x321   : > { %v1206_v38 = vrot.slane %v1205_v21, 1  ;;  %v1213_v51 = vrot.slane %v1212_v43, 1  ;;  %v1134_v49 = vrot.slane %v1133_v31, 4  ;;  %v1141_v55 = vrot.slane %v1140_v23, 4 }
 0x322   : > { %v2401_v46 = vadd.f32 %v1220_v42, %v1219_v44  ;;  %v1107_v5 = vadd.f32 %v1106_v40, %v1105_v8  ;;  %v1114_v45 = vadd.f32 %v1113_v58, %v1112_v47  ;;  %v1227_v3 = vrot.slane %v1226_v41, 1 }
 0x323   : > { %v2403_v29 = vadd.f32 %v1206_v38, %v1205_v21  ;;  %v1135_v24 = vadd.f32 %v1134_v49, %v1133_v31  ;;  %v1142_v1 = vadd.f32 %v1141_v55, %v1140_v23  ;;  %v2405_v22 = vadd.f32 %v1213_v51, %v1212_v43 }
 0x324   : > { %v1108_v39 = vrot.slane %v1107_v5, 2  ;;  %v1115_v20 = vrot.slane %v1114_v45, 2  ;;  %v1292_v61 = vmul.f32 %v1906_v50, %v2357_v26  ;;  %v1311_v44 = vsel %vm1008_vm3, %v1291_v16, 0.0 }
 0x325   : > { %v1136_v4 = vrot.slane %v1135_v24, 2  ;;  %v1143_v30 = vrot.slane %v1142_v1, 2  ;;  %v1099_v8 = vmul.f32 %v1876_v57, %v2355_v25  ;;  %v1312_v40 = vrot.slane %v1311_v44, 4 }
 0x326   : > { %v1109_v47 = vadd.f32 %v1108_v39, %v1107_v5  ;;  %v1116_v21 = vadd.f32 %v1115_v20, %v1114_v45  ;;  %v1318_v43 = vsel %vm1008_vm3, %v1292_v61, 0.0  ;;  %v1100_v15 = vmul.f32 %v1877_v52, %v2357_v26 }
 0x327   : > { %v1137_v58 = vadd.f32 %v1136_v4, %v1135_v24  ;;  %v2415_v42 = vadd.f32 %v1143_v30, %v1142_v1  ;;  %v1319_v31 = vrot.slane %v1318_v43, 4  ;;  %v1313_v16 = vadd.f32 %v1312_v40, %v1311_v44 }
 0x328   : > { %v1110_v50 = vrot.slane %v1109_v47, 1  ;;  %v1117_v23 = vrot.slane %v1116_v21, 1  ;;  %v1119_v38 = vsel %vm1008_vm3, %v1099_v8, 0.0  ;;  %v2421_v51 = vadd.f32 %v1227_v3, %v1226_v41 }
 0x329   : > { %v1138_v57 = vrot.slane %v1137_v58, 1  ;;  %v1320_v49 = vadd.f32 %v1319_v31, %v1318_v43  ;;  %v1120_v55 = vrot.slane %v1119_v38, 4  ;;  %v1145_v5 = vrot.slane %v2415_v42, 1 }
 0x32a   : > { %v2424_v4 = vadd.f32 %v1110_v50, %v1109_v47  ;;  %v1314_v45 = vrot.slane %v1313_v16, 2  ;;  %v1126_v24 = vsel %vm1008_vm3, %v1100_v15, 0.0  ;;  %v2427_v1 = vadd.f32 %v1117_v23, %v1116_v21 }
 0x32b   : > { %v1321_v17 = vrot.slane %v1320_v49, 2  ;;  %v1121_v52 = vadd.f32 %v1120_v55, %v1119_v38  ;;  %v1127_v39 = vrot.slane %v1126_v24, 4  ;;  %v1103_v41 = vmul.f32 %v1917_v63, %v2383_v48 }
 0x32c   : > { %v1315_v20 = vadd.f32 %v1314_v45, %v1313_v16  ;;  %v1104_v3 = vmul.f32 %v1918_v62, %v2399_v56  ;;  %v1289_v61 = vmul.f32 %v1893_v60, %v2361_v32  ;;  %v1290_v47 = vmul.f32 %v1894_v59, %v2363_v35 }
 0x32d   : > { %v1322_v30 = vadd.f32 %v1321_v17, %v1320_v49  ;;  %v1122_v44 = vrot.slane %v1121_v52, 2  ;;  %v1128_v8 = vadd.f32 %v1127_v39, %v1126_v24  ;;  %v1147_v40 = vsel %vm1008_vm3, %v1103_v41, 0.0 }
 0x32e   : > { %v1316_v21 = vrot.slane %v1315_v20, 1  ;;  %v1154_v63 = vsel %vm1008_vm3, %v1104_v3, 0.0  ;;  %v1297_v43 = vsel %vm1008_vm3, %v1289_v61, 0.0  ;;  %v1148_v15 = vrot.slane %v1147_v40, 4 }
 0x32f   : > { %v1323_v27 = vrot.slane %v1322_v30, 1  ;;  %v1123_v62 = vadd.f32 %v1122_v44, %v1121_v52  ;;  %v1129_v31 = vrot.slane %v1128_v8, 2  ;;  %v2444_v50 = vadd.f32 %v1138_v57, %v1137_v58 }
 0x330   : > { %v1155_v60 = vrot.slane %v1154_v63, 4  ;;  %v1298_v23 = vrot.slane %v1297_v43, 4  ;;  %v1304_v16 = vsel %vm1008_vm3, %v1290_v47, 0.0  ;;  %v2447_v38 = vadd.f32 %v1316_v21, %v1315_v20 }
 0x331   : > { %v1124_v28 = vrot.slane %v1123_v62, 1  ;;  %v1130_v59 = vadd.f32 %v1129_v31, %v1128_v8  ;;  %v1149_v49 = vadd.f32 %v1148_v15, %v1147_v40  ;;  %v1305_v24 = vrot.slane %v1304_v16, 4 }
 0x332   : > { %v2449_v55 = vadd.f32 %v1155_v60, %v1154_v63  ;;  %v1299_v45 = vadd.f32 %v1298_v23, %v1297_v43  ;;  %v1293_v17 = vmul.f32 %v1923_v11, %v2385_v6  ;;  %v2454_v52 = vadd.f32 %v1323_v27, %v1322_v30 }
 0x333   : > { %v2456_v58 = vadd.f32 %v1124_v28, %v1123_v62  ;;  %v1131_v57 = vrot.slane %v1130_v59, 1  ;;  %v1294_v39 = vmul.f32 %v1924_v7, %v2387_v14  ;;  %v1150_v20 = vrot.slane %v1149_v49, 2 }
 0x334   : > { %v1300_v41 = vrot.slane %v1299_v45, 2  ;;  %v1306_v3 = vadd.f32 %v1305_v24, %v1304_v16  ;;  %v1325_v61 = vsel %vm1008_vm3, %v1293_v17, 0.0  ;;  %v1157_v8 = vrot.slane %v2449_v55, 2 }
 0x335   : > { %v2462_v44 = vadd.f32 %v1131_v57, %v1130_v59  ;;  %v1326_v47 = vrot.slane %v1325_v61, 4  ;;  %v1332_v11 = vsel %vm1008_vm3, %v1294_v39, 0.0  ;;  %v1197_v33 = vmul.f32 %v1911_v9, %v2385_v6 }
 0x336   : > { %v1301_v30 = vadd.f32 %v1300_v41, %v1299_v45  ;;  %v1307_v21 = vrot.slane %v1306_v3, 2  ;;  %v1333_v40 = vrot.slane %v1332_v11, 4  ;;  %v1198_v63 = vmul.f32 %v1912_v12, %v2387_v14 }
 0x337   : > { %v1327_v7 = vadd.f32 %v1326_v47, %v1325_v61  ;;  %v1295_v43 = vmul.f32 %v1933_v2, %v2383_v48  ;;  %v1296_v27 = vmul.f32 %v1934_v0, %v2399_v56  ;;  %v1229_v60 = vsel %vm1008_vm3, %v1197_v33, 0.0 }
 0x338   : > { %v1302_v62 = vrot.slane %v1301_v30, 1  ;;  %v1308_v31 = vadd.f32 %v1307_v21, %v1306_v3  ;;  %v1334_v15 = vadd.f32 %v1333_v40, %v1332_v11  ;;  %v1230_v9 = vrot.slane %v1229_v60, 4 }
 0x339   : > { %v1328_v23 = vrot.slane %v1327_v7, 2  ;;  %v1236_v16 = vsel %vm1008_vm3, %v1198_v63, 0.0  ;;  %v1339_v34 = vsel %vm1008_vm3, %v1295_v43, 0.0  ;;  %v2481_v12 = vadd.f32 %v1150_v20, %v1149_v49 }
 0x33a   : > { %v1309_v28 = vrot.slane %v1308_v31, 1  ;;  %v1335_v59 = vrot.slane %v1334_v15, 2  ;;  %v1237_v2 = vrot.slane %v1236_v16, 4  ;;  %v1231_v24 = vadd.f32 %v1230_v9, %v1229_v60 }
 0x33b   : > { %v1329_v45 = vadd.f32 %v1328_v23, %v1327_v7  ;;  %v1340_v36 = vrot.slane %v1339_v34, 4  ;;  %v1346_v0 = vsel %vm1008_vm3, %v1296_v27, 0.0  ;;  %v2484_v17 = vadd.f32 %v1302_v62, %v1301_v30 }
 0x33c   : > { %v2486_v57 = vadd.f32 %v1335_v59, %v1334_v15  ;;  %v1238_v39 = vadd.f32 %v1237_v2, %v1236_v16  ;;  %v1347_v41 = vrot.slane %v1346_v0, 4  ;;  %v1232_v61 = vrot.slane %v1231_v24, 2 }
 0x33d   : > { %v1330_v3 = vrot.slane %v1329_v45, 1  ;;  %v1341_v47 = vadd.f32 %v1340_v36, %v1339_v34  ;;  %v1199_v49 = vmul.f32 %v1928_v10, %v2383_v48  ;;  %v2491_v20 = vadd.f32 %v1309_v28, %v1308_v31 }
 0x33e   : > { %v1239_v11 = vrot.slane %v1238_v39, 2  ;;  %v2493_v21 = vadd.f32 %v1347_v41, %v1346_v0  ;;  %v1200_v30 = vmul.f32 %v1929_v18, %v2399_v56  ;;  %v1337_v40 = vrot.slane %v2486_v57, 1 }
 0x33f   : > { %v2499_v33 = vadd.f32 %v1232_v61, %v1231_v24  ;;  %v1342_v7 = vrot.slane %v1341_v47, 2  ;;  %v1243_v63 = vsel %vm1008_vm3, %v1199_v49, 0.0  ;;  %v2502_v43 = vadd.f32 %v1330_v3, %v1329_v45 }
 0x340   : > { %v2504_v27 = vadd.f32 %v1239_v11, %v1238_v39  ;;  %v1244_v10 = vrot.slane %v1243_v63, 4  ;;  %v1250_v62 = vsel %vm1008_vm3, %v1200_v30, 0.0  ;;  %v1349_v15 = vrot.slane %v2493_v21, 2 }
 0x341   : > { %v1234_v31 = vrot.slane %v2499_v33, 1  ;;  %v1251_v37 = vrot.slane %v1250_v62, 4  ;;  %v2702_v18 = vunpack.i.l.bf16 %v2329_v53  ;;  %v2512_v23 = vadd.f32 %v1342_v7, %v1341_v47 }
 0x342   : > { %v1245_v9 = vadd.f32 %v1244_v10, %v1243_v63  ;;  %v2703_v16 = vunpack.i.h.bf16 %v2329_v53  ;;  %v2704_v28 = vunpack.i.l.bf16 %v2331_v54  ;;  %v1241_v2 = vrot.slane %v2504_v27, 1 }
 0x343   : > { %v1002_v60 = vmul.f32 %v2702_v18, %v2355_v25  ;;  %v2521_v45 = vadd.f32 %v1251_v37, %v1250_v62  ;;  %v2705_v25 = vunpack.i.h.bf16 %v2331_v54  ;;  %v2706_v54 = vunpack.i.l.bf16 %v2347_v13 }
 0x344   : > { %v1003_v34 = vmul.f32 %v2703_v16, %v2357_v26  ;;  %v1000_v59 = vmul.f32 %v2704_v28, %v2361_v32  ;;  %v1246_v0 = vrot.slane %v1245_v9, 2  ;;  %v2707_v63 = vunpack.i.h.bf16 %v2347_v13 }
 0x345   : > { %v1023_v24 = vsel %vm1008_vm3, %v1002_v60, 0.0  ;;  %v1001_v36 = vmul.f32 %v2705_v25, %v2363_v35  ;;  %v1253_v26 = vrot.slane %v2521_v45, 2  ;;  %v1006_v35 = vmul.f32 %v2706_v54, %v2383_v48 }
 0x346   : > { %v1024_v39 = vrot.slane %v1023_v24, 4  ;;  %v1030_v41 = vsel %vm1008_vm3, %v1003_v34, 0.0  ;;  %v1009_v53 = vsel %vm1008_vm3, %v1000_v59, 0.0  ;;  %v2531_v47 = vadd.f32 %v1246_v0, %v1245_v9 }
 0x347   : > { %v1031_v3 = vrot.slane %v1030_v41, 4  ;;  %v1010_v32 = vrot.slane %v1009_v53, 4  ;;  %v1016_v61 = vsel %vm1008_vm3, %v1001_v36, 0.0  ;;  %v1007_v10 = vmul.f32 %v2707_v63, %v2399_v56 }
 0x348   : > { %v1025_v49 = vadd.f32 %v1024_v39, %v1023_v24  ;;  %v1017_v11 = vrot.slane %v1016_v61, 4  ;;  %v2708_v62 = vunpack.i.l.bf16 %v2351_v19  ;;  %v1051_v9 = vsel %vm1008_vm3, %v1006_v35, 0.0 }
 0x349   : > { %v1032_v30 = vadd.f32 %v1031_v3, %v1030_v41  ;;  %v1011_v7 = vadd.f32 %v1010_v32, %v1009_v53  ;;  %v2709_v16 = vunpack.i.h.bf16 %v2351_v19  ;;  %v1052_v59 = vrot.slane %v1051_v9, 4 }
 0x34a   : > { %v1004_v37 = vmul.f32 %v2708_v62, %v2385_v6  ;;  %v1026_v18 = vrot.slane %v1025_v49, 2  ;;  %v1018_v60 = vadd.f32 %v1017_v11, %v1016_v61  ;;  %v1058_v24 = vsel %vm1008_vm3, %v1007_v10, 0.0 }
 0x34b   : > { %v1005_v34 = vmul.f32 %v2709_v16, %v2387_v14  ;;  %v1033_v48 = vrot.slane %v1032_v30, 2  ;;  %v1012_v28 = vrot.slane %v1011_v7, 2  ;;  %v1059_v25 = vrot.slane %v1058_v24, 4 }
 0x34c   : > { %v1027_v13 = vadd.f32 %v1026_v18, %v1025_v49  ;;  %v1019_v56 = vrot.slane %v1018_v60, 2  ;;  %v1037_v6 = vsel %vm1008_vm3, %v1004_v37, 0.0  ;;  %v1053_v39 = vadd.f32 %v1052_v59, %v1051_v9 }
 0x34d   : > { %v1034_v36 = vadd.f32 %v1033_v48, %v1032_v30  ;;  %v1013_v0 = vadd.f32 %v1012_v28, %v1011_v7  ;;  %v1038_v41 = vrot.slane %v1037_v6, 4  ;;  %v1060_v53 = vadd.f32 %v1059_v25, %v1058_v24 }
 0x34e   : > { %v1028_v19 = vrot.slane %v1027_v13, 1  ;;  %v1020_v14 = vadd.f32 %v1019_v56, %v1018_v60  ;;  %v1044_v3 = vsel %vm1008_vm3, %v1005_v34, 0.0  ;;  %v1054_v11 = vrot.slane %v1053_v39, 2  ;;  %v1968_v34 = vld [vmem:[%s2692_s9 + $0x18] sm:$0xff]  }
 0x34f   : > { %v1035_v32 = vrot.slane %v1034_v36, 1  ;;  %v1014_v61 = vrot.slane %v1013_v0, 1  ;;  %v1039_v49 = vadd.f32 %v1038_v41, %v1037_v6  ;;  %v1235_v54 = vadd.f32 %v1234_v31, %v2499_v33  ;;  %1797 = vmatpush3.bf16.msra.mxu1 %v1968_v34 }
 0x350   : > { %v1021_v35 = vrot.slane %v1020_v14, 1  ;;  %v1061_v63 = vrot.slane %v1060_v53, 2  ;;  %v1045_v30 = vrot.slane %v1044_v3, 4  ;;  %v1029_v7 = vadd.f32 %v1028_v19, %v1027_v13 }
 0x351   : > { %v1015_v10 = vadd.f32 %v1014_v61, %v1013_v0  ;;  %v1055_v62 = vadd.f32 %v1054_v11, %v1053_v39  ;;  %v1040_v37 = vrot.slane %v1039_v49, 2  ;;  %v1036_v18 = vadd.f32 %v1035_v32, %v1034_v36  ;;  %v1518_v61 = vld [vmem:[%s478_s16] sm:$0xff]  ;;  %s451_s16 = scalar_lea.vmem [#allocation2], %s1654_s28  ;;  %s2021_s28 = sshll.u32 %s2106_s20, 4  ;;  %s2022_s28 = int_to_ptr.vmem [resolvable:$false] %s2021_s28 }
 0x352   : > { %v1022_v60 = vadd.f32 %v1021_v35, %v1020_v14  ;;  %v2550_v9 = vadd.f32 %v1061_v63, %v1060_v53  ;;  %v1046_v16 = vadd.f32 %v1045_v30, %v1044_v3  ;;  %v1242_v33 = vadd.f32 %v1241_v2, %v2504_v27  ;;  %s2023_s1 = scalar_lea.vmem %s2022_s28, 128 }
 0x353   : > { %v1041_v48 = vadd.f32 %v1040_v37, %v1039_v49  ;;  %v1248_v31 = vrot.slane %v2531_v47, 1  ;;  %v1254_v28 = vadd.f32 %v1253_v26, %v2521_v45  ;;  %v1056_v24 = vrot.slane %v1055_v62, 1 }
 0x354   : > { %v1362_v59 = vsel %vm1361_vm4, %v1022_v60, %v1015_v10  ;;  %v1047_v13 = vrot.slane %v1046_v16, 2  ;;  %v1402_v56 = vsel %vm1361_vm4, %v2405_v22, %v2403_v29  ;;  %v1146_v27 = vadd.f32 %v1145_v5, %v2415_v42 }
 0x355   : > { %v1042_v25 = vrot.slane %v1041_v48, 1  ;;  %v1255_v6 = vrot.slane %v1254_v28, 1  ;;  %v1403_v36 = vsel %vm1363_vm5, %v2401_v46, %v1402_v56  ;;  %v1152_v26 = vrot.slane %v2481_v12, 1 }
 0x356   : > { %v1048_v2 = vadd.f32 %v1047_v13, %v1046_v16  ;;  %v1404_v45 = vsel %vm1365_vm6, %v2421_v51, %v1403_v36  ;;  %v1158_v29 = vadd.f32 %v1157_v8, %v2449_v55  ;;  %v1249_v0 = vadd.f32 %v1248_v31, %v2531_v47  ;;  %v1703_v31 = vld [vmem:[%s2693_s10] ss:$0 sm:$0xff] }
 0x357   : > { %v1043_v22 = vadd.f32 %v1042_v25, %v1041_v48  ;;  %v1405_v46 = vsel %vm1367_vm7, %v1235_v54, %v1404_v45  ;;  %v1384_v42 = vsel %vm1361_vm4, %v2427_v1, %v2424_v4  ;;  %v1256_v39 = vadd.f32 %v1255_v6, %v1254_v28 }
 0x358   : > { %v1049_v5 = vrot.slane %v1048_v2, 1  ;;  %v1406_v51 = vsel %vm1369_vm8, %v1242_v33, %v1405_v46  ;;  %v1159_v41 = vrot.slane %v1158_v29, 1  ;;  %v1153_v14 = vadd.f32 %v1152_v26, %v2481_v12 }
 0x359   : > { %v1407_v19 = vsel %vm1371_vm9, %v1249_v0, %v1406_v51  ;;  %v1385_v55 = vsel %vm1363_vm5, %v2456_v58, %v1384_v42  ;;  %v1344_v8 = vrot.slane %v2512_v23, 1  ;;  %v1338_v53 = vadd.f32 %v1337_v40, %v2486_v57 }
 0x35a   : > { %v1050_v47 = vadd.f32 %v1049_v5, %v1048_v2  ;;  %v1408_v4 = vsel %vm1373_vm10, %v1256_v39, %v1407_v19  ;;  %v1386_v1 = vsel %vm1365_vm6, %v2462_v44, %v1385_v55  ;;  %v1160_v12 = vadd.f32 %v1159_v41, %v1158_v29 }
 0x35b   : > { %1409 = vrot.lane.b32.xlu0 %v1408_v4, %s2102_s23  ;;  %v1387_v58 = vsel %vm1367_vm7, %v2444_v50, %v1386_v1  ;;  %v1350_v3 = vadd.f32 %v1349_v15, %v2493_v21  ;;  %v1420_v32 = vsel %vm1361_vm4, %v2491_v20, %v2484_v17  ;;  %v1345_v11 = vadd.f32 %v1344_v8, %v2512_v23  ;;  %s1542_s23 = sshll.u32 %s451_s16, 4  ;;  %s2638_s23 = int_to_ptr.vmem [resolvable:$true] %s1542_s23 }
 0x35c   : > { %v1388_v44 = vsel %vm1369_vm8, %v1146_v27, %v1387_v58  ;;  %v1421_v57 = vsel %vm1363_vm5, %v2447_v38, %v1420_v32  ;;  %v1063_v40 = vrot.slane %v2550_v9, 1  ;;  %v1364_v15 = vsel %vm1363_vm5, %v1029_v7, %v1362_v59  ;;  %s2017_s14 = scalar_lea.vmem %s2638_s23, 64  ;;  %p2024_p1 = scmp.lt.s32.totalorder %s2638_s23, %s2022_s28 }
 0x35d   : > { %v1389_v50 = vsel %vm1371_vm9, %v1153_v14, %v1388_v44  ;;  %v1351_v49 = vrot.slane %v1350_v3, 1  ;;  %v1422_v21 = vsel %vm1365_vm6, %v2454_v52, %v1421_v57  ;;  %v1057_v54 = vadd.f32 %v1056_v24, %v1055_v62  ;;  %p2018_p12 = scmp.ne.s32.totalorder %s2638_s23, %s2017_s14  ;;  %p2025_p2 = scmp.lt.s32.totalorder %s2023_s1, %s2017_s14 }
 0x35e   : > { %v1390_v17 = vsel %vm1373_vm10, %v1160_v12, %v1389_v50  ;;  %v1423_v20 = vsel %vm1367_vm7, %v2502_v43, %v1422_v21  ;;  %v1366_v23 = vsel %vm1365_vm6, %v1036_v18, %v1364_v15  ;;  %v1064_v30 = vadd.f32 %v1063_v40, %v2550_v9 }
 0x35f   : > { %1391 = vrot.lane.b32.xlu1 %v1390_v17, %s2103_s15  ;;  %1521 = vperm.xlu0 %1935, %v1518_v61   ;;  %v1352_v38 = vadd.f32 %v1351_v49, %v1350_v3  ;;  %v1424_v35 = vsel %vm1369_vm8, %v1338_v53, %v1423_v20  ;;  %v1368_v63 = vsel %vm1367_vm7, %v1043_v22, %v1366_v23  ;;  %v2710_v62 = vmov 0.0   ;;  %p2019_p13 = pnand %p2018_p12, %p2207_p4  ;;  %p2026_p3 = por %p2025_p2, %p2024_p1 }
 0x360   : > { %v1425_v52 = vsel %vm1371_vm9, %v1345_v11, %v1424_v35  ;;  %v1370_v7 = vsel %vm1369_vm8, %v1050_v47, %v1368_v63  ;;  %1798 = vmatprep.mubr.msk.bf16.mxu1 %vm2104_vm11, %v2710_v62 }
 0x361   : > { %v1426_v10 = vsel %vm1373_vm10, %v1352_v38, %v1425_v52  ;;  %v1372_v43 = vsel %vm1371_vm9, %v1057_v54, %v1370_v7  ;;  %p2020_p0 = pneg %p2019_p13 }
 0x362   : > { %v1374_v37 = vsel %vm1373_vm10, %v1064_v30, %v1372_v43 }
 0x363   : > { %1427 = vrot.lane.b32.xlu1 %v1426_v10, %s2105_s24  ;;  %p2027_p5 = pnand %p2026_p3, %p2020_p0 }
 0x3cd   : > { %v1410_v60 = vpop.permute.xlu0 %1409 }
 0x3d1   : > { %v1392_v18 = vpop.permute.xlu1 %1391 }
 0x3d2   : > { %v1430_v16 = vsel %vm1008_vm3, %v1374_v37, %v1392_v18 }
 0x3d3   : > { %v1431_v34 = vsel %vm658_vm2, %v1430_v16, %v1410_v60 }
 0x3d5   : > { %v1428_v9 = vpop.permute.xlu1 %1427 }
 0x3d6   : > { %v1433_v48 = vsel %vm1432_vm12, %v1431_v34, %v1428_v9 }
 0x3d7   : > { %v1434_v33 = vpack.c.bf16 %v1433_v48, %v1433_v48 }
 0x3d9   : > { %1799 = vmatmul.mubr.msk.bf16.vlgmr.msra.gmra.mrb[8].mxu1 %vm1474_vm13, %v1434_v33 }
 0x3de   : > { %v1522_v13 = vpop.permute.xlu0 %1521 }
 0x4ac   : > { %v1512_v28 = vpop.f32.mrb[8].mxu1 }
 0x4ad   : > { %v1513_v59 = vadd.f32 %v1703_v31, %v1512_v28  ;;  %v1800_v24 = vpop.f32.mrb[9].mxu1 }
 0x4ae   : > { %v1515_v56 = vpop.f32.mrb[10].mxu1 }
 0x4af   : > { %v1524_v25 = vmul.f32 %v1522_v13, %v1513_v59  ;;  %v1801_v6 = vpop.f32.mrb[11].mxu1 }
 0x4b1   : > { %v1525_v36 = vpack.c.bf16 %v1524_v25, %v1524_v25 }
 0x4b3   : > { %1526 = vst [vmem:[%s451_s16] sm:$0xf] %v1525_v36 }
 0x4b4   : > { %2030 = shalt.err (!%p2027_p5)
}
 0x4b5   : > { %s2031_s26 = scalar_lea.hbm %s2636_s0, 64  ;;  %s2035_s15 = scalar_lea.hbm %s2694_s11, 128 }
 0x4b6   : > { %p2032_p6 = scmp.ne.s32.totalorder %s2636_s0, %s2031_s26  ;;  %p2036_p10 = scmp.lt.u32.totalorder %s2636_s0, %s2694_s11 }
 0x4b7   : > { %p2037_p11 = scmp.lt.u32.totalorder %s2035_s15, %s2031_s26  ;;  %p2039_p13 = scmp.lt.u32.totalorder %s2031_s26, %s2636_s0 }
 0x4b8   : > { %p2033_p7 = pnand %p2032_p6, %p2207_p4 }
 0x4b9   : > { %p2038_p12 = por %p2037_p11, %p2036_p10 }
 0x4ba   : > { %p2034_p9 = pneg %p2033_p7 }
 0x4bb   : > { %p2040_p0 = por %p2039_p13, %p2038_p12 }
 0x4bd   : > { %p2041_p1 = pnand %p2040_p0, %p2034_p9 }
 0x4bf   : > { %2044 = shalt.err (!%p2041_p1)
}
 0x4c0   : > { %1803 = dma.vmem_to_hbm [thread:$0]  (%p2207_p4), %s2638_s23, 64, %s2636_s0, %s1528_s12  }
 0x4c1 PF: > { %p1809_p2 = scmp.ge.s32.totalorder %s2095_s22, 2  ;;  %s1554_s1 = sand.u32 1, %s2075_s17  }
 0x4c2   : > { %s1555_s14 = scalar_lea.sflag [#allocation3], %s1554_s1 }
 0x4c3   : > { %p1806_p3 = pnand %p1809_p2, %p2214_p8 }
 0x4c5   : > { %2070 = dma.done.wait (!%p1806_p3), %s1555_s14, 64  }
 0x4c6   : > { %2072 = vsyncadd (!%p1806_p3), %s1555_s14, 4294967232  ;;  %s24_s22 = sadd.s32 1, %s2095_s22   ;;  %s2711_s17 = smov %s2079_s18 }
 0x4c7   : > { %p21_p5 = scmp.ge.s32.totalorder %s24_s22, 4   ;;  %s2712_s18 = smov %s2083_s19 }
 0x4c8   : > { %s2713_s19 = smov %s2220_s30  ;;  %s2714_s20 = smov %s2091_s21 }
 0x4c9   : > { %s2715_s21 = smov %s2717_s25  ;;  %23 = sbr.rel (!%p21_p5) target bundleno = 7 (0x7), region = 105 }
 0x4d0   :  { %1560 = vsyncpa [#allocation3], 1 }
 0x4d1   :  { %1562 = vsyncpa [#allocation3 + $0x1], 1 }

</bundles_post_ra>
